<compile_context>
chip_gen: v7x
topology: tpu7x:2x2x1
jax: 0.10.0
libtpu: 0.0.40
codegen_flags: <defaults>
</compile_context>

<pallas_src>
import math
import jax
import jax.numpy as jnp
from jax.experimental import pallas as pl
from jax.experimental.pallas import tpu as pltpu


# -----------------------------------------------------------------------------
# Fused kernel: projections (per-head weight blocks) + attention + fc + add + LN
# -----------------------------------------------------------------------------
def _make_fused_mha_kernel(n_head, b_tile, len_q, len_k,
                           compute_dtype, approx_recip, emit_attn):
    def kernel(q_ref, k_ref, v_ref, wq_ref, wk_ref, wv_ref,
               fcw_ref, fcb_ref, gamma_ref, beta_ref, *out_refs):
        if emit_attn:
            out_ref, attn_ref = out_refs
        else:
            (out_ref,) = out_refs

        in_dim = q_ref.shape[-1]
        mq = b_tile * len_q
        mk = b_tile * len_k

        # Flatten batch rows into the matmul M dimension (lane dim unchanged,
        # leading dims merged -> free reshape).
        q_f32 = q_ref[...].reshape(mq, in_dim)          # residual, f32
        q = q_f32.astype(compute_dtype)
        k = k_ref[...].reshape(mk, in_dim).astype(compute_dtype)
        v = v_ref[...].reshape(mk, in_dim).astype(compute_dtype)

        # f32 accumulator for fc output, kept in vregs across the head loop.
        y = jnp.zeros((mq, in_dim), jnp.float32)

        for h in range(n_head):                          # static unroll (small)
            # Per-head projections; wq is pre-scaled by 1/temperature.
            qh = jnp.dot(q, wq_ref[h], preferred_element_type=jnp.float32)
            kh = jnp.dot(k, wk_ref[h], preferred_element_type=jnp.float32)
            vh = jnp.dot(v, wv_ref[h], preferred_element_type=jnp.float32)

            qh3 = qh.astype(compute_dtype).reshape(b_tile, len_q, -1)
            kh3 = kh.astype(compute_dtype).reshape(b_tile, len_k, -1)
            vh3 = vh.astype(compute_dtype).reshape(b_tile, len_k, -1)

            # scores = q @ k^T (batched over the batch tile, no transpose
            # materialization), f32 accumulation.
            s = jnp.einsum('bqd,bkd->bqk', qh3, kh3,
                           preferred_element_type=jnp.float32)

            # softmax over the last axis in f32 (torch Softmax(dim=2))
            s = s - jnp.max(s, axis=-1, keepdims=True)
            e = jnp.exp(s)
            attn = e * pl.reciprocal(jnp.sum(e, axis=-1, keepdims=True),
                                     approx=approx_recip)
            if emit_attn:
                attn_ref[h] = attn.astype(attn_ref.dtype)

            # attn @ v, then fc folded into the loop (no concatenate).
            o = jnp.einsum('bqk,bkd->bqd', attn.astype(compute_dtype), vh3,
                           preferred_element_type=jnp.float32)
            o = o.reshape(mq, -1)
            y = y + jnp.dot(o.astype(compute_dtype), fcw_ref[h],
                            preferred_element_type=jnp.float32)

        # bias + residual + LayerNorm (dropouts identity in eval mode)
        y = y + fcb_ref[...] + q_f32
        mean = jnp.mean(y, axis=-1, keepdims=True)
        var = jnp.mean((y - mean) ** 2, axis=-1, keepdims=True)  # biased (torch LN)
        yn = (y - mean) * jax.lax.rsqrt(var + 1e-5)
        yn = yn * gamma_ref[...] + beta_ref[...]
        out_ref[...] = yn.reshape(out_ref.shape).astype(out_ref.dtype)

    return kernel


# -----------------------------------------------------------------------------
# Wrapper
# -----------------------------------------------------------------------------
def multi_head_attention(q, k, v, params, *, n_head, d_k, d_v,
                         compute_dtype=jnp.bfloat16, return_attn=True,
                         core_parallel=False):
    """Forward pass matching MultiHeadAttention.forward (eval mode, mask=None).

    compute_dtype: dtype of MXU operands (default bfloat16).  Accumulation /
                   softmax / LayerNorm math stays f32.
    return_attn:   if False, the attention-probability matrix is neither
                   computed into HBM nor returned (big bandwidth win).
    core_parallel: on v7x with multiple grid steps, set True to shard the
                   batch grid axis across the two TensorCores.

    Returns (output, attn):
      output: (sz_b, len_q, in_dim)          float32
      attn:   (n_head*sz_b, len_q, len_k)    float32, or None if return_attn=False
    """
    sz_b, len_q, in_dim = q.shape
    _, len_k, _ = k.shape
    _, len_v, _ = v.shape
    temperature = float(math.sqrt(d_k))
    use_bf16 = jnp.dtype(compute_dtype) == jnp.dtype(jnp.bfloat16)

    # Batch tile: largest divisor of sz_b keeping M = B_TILE*len_q <= 1024 rows.
    b_tile = 1
    for cand in range(sz_b, 0, -1):
        if sz_b % cand == 0 and cand * len_q <= 1024:
            b_tile = cand
            break
    grid = (sz_b // b_tile,)

    # torch Linear weight layout is (out_features, in_features); x @ W.T.
    # Per-head 3-D weight blocks; 1/temperature folded into the q projection.
    wq = (params["w_qs"].T / temperature).reshape(in_dim, n_head, d_k)
    wq = wq.transpose(1, 0, 2).astype(compute_dtype)                 # (n_head, in_dim, d_k)
    wk = params["w_ks"].T.reshape(in_dim, n_head, d_k).transpose(1, 0, 2).astype(compute_dtype)
    wv = params["w_vs"].T.reshape(in_dim, n_head, d_v).transpose(1, 0, 2).astype(compute_dtype)
    fcw = params["fc_w"].T.reshape(n_head, d_v, in_dim).astype(compute_dtype)  # (n_head, d_v, in_dim)
    fcb = params["fc_b"].reshape(1, in_dim).astype(jnp.float32)
    gamma = params["ln_g"].reshape(1, in_dim).astype(jnp.float32)
    beta = params["ln_b"].reshape(1, in_dim).astype(jnp.float32)

    kernel = _make_fused_mha_kernel(n_head, b_tile, len_q, len_k,
                                    compute_dtype, use_bf16, return_attn)

    out_shapes = [jax.ShapeDtypeStruct((sz_b, len_q, in_dim), jnp.float32)]
    out_specs = [pl.BlockSpec((b_tile, len_q, in_dim), lambda b: (b, 0, 0))]
    if return_attn:
        out_shapes.append(
            jax.ShapeDtypeStruct((n_head, sz_b, len_q, len_k), jnp.float32))
        out_specs.append(
            pl.BlockSpec((n_head, b_tile, len_q, len_k), lambda b: (0, b, 0, 0)))

    # Advisory cost estimate for XLA's scheduler.
    flops = 2 * sz_b * (
        len_q * in_dim * n_head * d_k        # q projection
        + len_k * in_dim * n_head * d_k      # k projection
        + len_v * in_dim * n_head * d_v      # v projection
        + n_head * len_q * len_k * d_k       # scores
        + n_head * len_q * len_k * d_v       # attn @ v
        + len_q * n_head * d_v * in_dim      # fc
    )
    transcendentals = sz_b * n_head * len_q * len_k + sz_b * len_q   # exp + rsqrt
    bytes_accessed = (
        (q.size + k.size + v.size + sz_b * len_q * in_dim) * 4
        + (wq.size + wk.size + wv.size + fcw.size) * jnp.dtype(compute_dtype).itemsize
        + (fcb.size + gamma.size + beta.size) * 4
        + (n_head * sz_b * len_q * len_k * 4 if return_attn else 0)
    )
    cost = pl.CostEstimate(flops=int(flops),
                           transcendentals=int(transcendentals),
                           bytes_accessed=int(bytes_accessed))

    dim_sem = pltpu.CORE_PARALLEL if core_parallel else "parallel"

    results = pl.pallas_call(
        kernel,
        out_shape=tuple(out_shapes),
        grid_spec=pltpu.PrefetchScalarGridSpec(
            num_scalar_prefetch=0,
            grid=grid,
            in_specs=[
                pl.BlockSpec((b_tile, len_q, in_dim), lambda b: (b, 0, 0)),
                pl.BlockSpec((b_tile, len_k, in_dim), lambda b: (b, 0, 0)),
                pl.BlockSpec((b_tile, len_v, in_dim), lambda b: (b, 0, 0)),
                pl.BlockSpec((n_head, in_dim, d_k), lambda b: (0, 0, 0)),
                pl.BlockSpec((n_head, in_dim, d_k), lambda b: (0, 0, 0)),
                pl.BlockSpec((n_head, in_dim, d_v), lambda b: (0, 0, 0)),
                pl.BlockSpec((n_head, d_v, in_dim), lambda b: (0, 0, 0)),
                pl.BlockSpec((1, in_dim), lambda b: (0, 0)),
                pl.BlockSpec((1, in_dim), lambda b: (0, 0)),
                pl.BlockSpec((1, in_dim), lambda b: (0, 0)),
            ],
            out_specs=out_specs,
        ),
        compiler_params=pltpu.CompilerParams(dimension_semantics=(dim_sem,)),
        cost_estimate=cost,
    )(q, k, v, wq, wk, wv, fcw, fcb, gamma, beta)

    if return_attn:
        output, attn = results
        # Head-major (n_head, sz_b, len_q, len_k) -> torch layout: free reshape.
        attn = attn.reshape(n_head * sz_b, len_q, len_k)
        return output, attn
    (output,) = results
    return output, None


# -----------------------------------------------------------------------------
# Pure-JAX reference (mirrors the PyTorch forward, eval mode)
# -----------------------------------------------------------------------------
def _reference(q, k, v, params, *, n_head, d_k, d_v):
    sz_b, len_q, in_dim = q.shape
    _, len_k, _ = k.shape
    temperature = math.sqrt(d_k)
    residual = q
    qp = (q @ params["w_qs"].T).reshape(sz_b, len_q, n_head, d_k)
    kp = (k @ params["w_ks"].T).reshape(sz_b, len_k, n_head, d_k)
    vp = (v @ params["w_vs"].T).reshape(sz_b, len_k, n_head, d_v)
    qp = qp.transpose(2, 0, 1, 3).reshape(-1, len_q, d_k)
    kp = kp.transpose(2, 0, 1, 3).reshape(-1, len_k, d_k)
    vp = vp.transpose(2, 0, 1, 3).reshape(-1, len_k, d_v)
    attn = jnp.einsum("bqd,bkd->bqk", qp, kp) / temperature
    attn = jax.nn.softmax(attn, axis=2)
    out = jnp.einsum("bqk,bkd->bqd", attn, vp)
    out = out.reshape(n_head, sz_b, len_q, d_v).transpose(1, 2, 0, 3)
    out = out.reshape(sz_b, len_q, n_head * d_v)
    out = out @ params["fc_w"].T + params["fc_b"]
    out = out + residual
    mean = jnp.mean(out, axis=-1, keepdims=True)
    var = jnp.mean((out - mean) ** 2, axis=-1, keepdims=True)
    out = (out - mean) / jnp.sqrt(var + 1e-5) * params["ln_g"] + params["ln_b"]
    return out, attn


if __name__ == "__main__":
    # Small shapes consistent with the module.
    sz_b, seq_len = 2, 8
    in_dim, n_head, hidden_dim = 32, 2, 16
    d_k = d_v = hidden_dim

    key = jax.random.PRNGKey(0)
    k0, k1, k2, k3, k4, k5, k6 = jax.random.split(key, 7)

    std_proj = math.sqrt(2.0 / (in_dim + hidden_dim))
    std_fc = math.sqrt(2.0 / (n_head * hidden_dim + in_dim))  # xavier_normal_

    params = {
        # torch Linear weight layout: (out_features, in_features)
        "w_qs": std_proj * jax.random.normal(k0, (n_head * d_k, in_dim), jnp.float32),
        "w_ks": std_proj * jax.random.normal(k1, (n_head * d_k, in_dim), jnp.float32),
        "w_vs": std_proj * jax.random.normal(k2, (n_head * d_v, in_dim), jnp.float32),
        "fc_w": std_fc * jax.random.normal(k3, (in_dim, n_head * d_v), jnp.float32),
        "fc_b": jnp.zeros((in_dim,), jnp.float32),
        "ln_g": jnp.ones((in_dim,), jnp.float32),
        "ln_b": jnp.zeros((in_dim,), jnp.float32),
    }

    q = jax.random.normal(k4, (sz_b, seq_len, in_dim), jnp.float32)
    k = jax.random.normal(k5, (sz_b, seq_len, in_dim), jnp.float32)
    v = jax.random.normal(k6, (sz_b, seq_len, in_dim), jnp.float32)

    ref_out, ref_attn = _reference(q, k, v, params,
                                   n_head=n_head, d_k=d_k, d_v=d_v)

    # --- f32 MXU path: tight correctness check ---
    out, attn = multi_head_attention(q, k, v, params,
                                     n_head=n_head, d_k=d_k, d_v=d_v,
                                     compute_dtype=jnp.float32,
                                     return_attn=True)
    out = jax.block_until_ready(out)
    attn = jax.block_until_ready(attn)
    assert out.shape == (sz_b, seq_len, in_dim)
    assert attn.shape == (n_head * sz_b, seq_len, seq_len)
    assert jnp.allclose(out, ref_out, atol=1e-4, rtol=1e-4)
    assert jnp.allclose(attn, ref_attn, atol=1e-5, rtol=1e-5)

    # --- default bf16 MXU operands (f32 accumulation / softmax / LN math) ---
    out_bf, attn_bf = multi_head_attention(q, k, v, params,
                                           n_head=n_head, d_k=d_k, d_v=d_v,
                                           return_attn=True)
    out_bf = jax.block_until_ready(out_bf)
    attn_bf = jax.block_until_ready(attn_bf)
    assert out_bf.shape == (sz_b, seq_len, in_dim)
    assert attn_bf.shape == (n_head * sz_b, seq_len, seq_len)
    assert jnp.allclose(out_bf, ref_out, atol=1e-1, rtol=1e-1)
    assert jnp.allclose(attn_bf, ref_attn, atol=5e-2, rtol=5e-2)

    # --- attn output elided entirely (no O(len_q*len_k) HBM writeback) ---
    out_na, attn_na = multi_head_attention(q, k, v, params,
                                           n_head=n_head, d_k=d_k, d_v=d_v,
                                           return_attn=False)
    out_na = jax.block_until_ready(out_na)
    assert attn_na is None
    assert jnp.allclose(out_na, ref_out, atol=1e-1, rtol=1e-1)

    print("KERNEL_OK")
</pallas_src>

<mosaic_0001>
module attributes {stable_mosaic.version = 11 : i64} {
  func.func @kernel(%arg0: i32, %arg1: memref<2x8x32xf32, #tpu.memory_space<vmem>>, %arg2: memref<2x8x32xf32, #tpu.memory_space<vmem>>, %arg3: memref<2x8x32xf32, #tpu.memory_space<vmem>>, %arg4: memref<2x32x16xf32, #tpu.memory_space<vmem>>, %arg5: memref<2x32x16xf32, #tpu.memory_space<vmem>>, %arg6: memref<2x32x16xf32, #tpu.memory_space<vmem>>, %arg7: memref<2x16x32xf32, #tpu.memory_space<vmem>>, %arg8: memref<1x32xf32, #tpu.memory_space<vmem>>, %arg9: memref<1x32xf32, #tpu.memory_space<vmem>>, %arg10: memref<1x32xf32, #tpu.memory_space<vmem>>, %arg11: memref<2x8x32xf32, #tpu.memory_space<vmem>>, %arg12: memref<2x2x8x8xf32, #tpu.memory_space<vmem>>) attributes {dimension_semantics = [#tpu.dimension_semantics<parallel>], iteration_bounds = array<i64: 1>, scalar_prefetch = 0 : i64, scratch_operands = 0 : i64, tpu.core_type = #tpu.core_type<tc>, window_params = [{transform_indices = @transform_0, window_bounds = array<i64: 2, 8, 32>}, {transform_indices = @transform_1, window_bounds = array<i64: 2, 8, 32>}, {transform_indices = @transform_2, window_bounds = array<i64: 2, 8, 32>}, {pipeline_mode = #tpu.pipeline_mode<synchronous>, transform_indices = @transform_3, window_bounds = array<i64: 2, 32, 16>}, {pipeline_mode = #tpu.pipeline_mode<synchronous>, transform_indices = @transform_4, window_bounds = array<i64: 2, 32, 16>}, {pipeline_mode = #tpu.pipeline_mode<synchronous>, transform_indices = @transform_5, window_bounds = array<i64: 2, 32, 16>}, {pipeline_mode = #tpu.pipeline_mode<synchronous>, transform_indices = @transform_6, window_bounds = array<i64: 2, 16, 32>}, {pipeline_mode = #tpu.pipeline_mode<synchronous>, transform_indices = @transform_7, window_bounds = array<i64: 1, 32>}, {pipeline_mode = #tpu.pipeline_mode<synchronous>, transform_indices = @transform_8, window_bounds = array<i64: 1, 32>}, {pipeline_mode = #tpu.pipeline_mode<synchronous>, transform_indices = @transform_9, window_bounds = array<i64: 1, 32>}, {transform_indices = @transform_10, window_bounds = array<i64: 2, 8, 32>}, {transform_indices = @transform_11, window_bounds = array<i64: 2, 2, 8, 8>}]} {
    %c0 = arith.constant 0 : index
    %c0_0 = arith.constant 0 : index
    %c0_1 = arith.constant 0 : index
    %0 = vector.load %arg1[%c0, %c0_0, %c0_1] : memref<2x8x32xf32, #tpu.memory_space<vmem>>, vector<2x8x32xf32>
    %1 = vector.shape_cast %0 : vector<2x8x32xf32> to vector<16x32xf32>
    %c0_2 = arith.constant 0 : index
    %c0_3 = arith.constant 0 : index
    %c0_4 = arith.constant 0 : index
    %2 = vector.load %arg2[%c0_2, %c0_3, %c0_4] : memref<2x8x32xf32, #tpu.memory_space<vmem>>, vector<2x8x32xf32>
    %3 = vector.shape_cast %2 : vector<2x8x32xf32> to vector<16x32xf32>
    %c0_5 = arith.constant 0 : index
    %c0_6 = arith.constant 0 : index
    %c0_7 = arith.constant 0 : index
    %4 = vector.load %arg3[%c0_5, %c0_6, %c0_7] : memref<2x8x32xf32, #tpu.memory_space<vmem>>, vector<2x8x32xf32>
    %5 = vector.shape_cast %4 : vector<2x8x32xf32> to vector<16x32xf32>
    %cst = arith.constant 0.000000e+00 : f32
    %6 = vector.broadcast %cst : f32 to vector<16x32xf32>
    %c0_8 = arith.constant 0 : index
    %c0_9 = arith.constant 0 : index
    %c0_10 = arith.constant 0 : index
    %7 = vector.load %arg4[%c0_8, %c0_9, %c0_10] : memref<2x32x16xf32, #tpu.memory_space<vmem>>, vector<1x32x16xf32>
    %8 = vector.shape_cast %7 : vector<1x32x16xf32> to vector<32x16xf32>
    %cst_11 = arith.constant dense<0.000000e+00> : vector<16x16xf32>
    %9 = tpu.matmul %1, %8, %cst_11 {dimension_numbers = #tpu.dot_dimension_numbers<[1], [0], [0], [1], [0, 0, 1, 1], [], []>} : vector<16x32xf32>, vector<32x16xf32>, vector<16x16xf32> -> vector<16x16xf32>
    %c0_12 = arith.constant 0 : index
    %c0_13 = arith.constant 0 : index
    %c0_14 = arith.constant 0 : index
    %10 = vector.load %arg5[%c0_12, %c0_13, %c0_14] : memref<2x32x16xf32, #tpu.memory_space<vmem>>, vector<1x32x16xf32>
    %11 = vector.shape_cast %10 : vector<1x32x16xf32> to vector<32x16xf32>
    %cst_15 = arith.constant dense<0.000000e+00> : vector<16x16xf32>
    %12 = tpu.matmul %3, %11, %cst_15 {dimension_numbers = #tpu.dot_dimension_numbers<[1], [0], [0], [1], [0, 0, 1, 1], [], []>} : vector<16x32xf32>, vector<32x16xf32>, vector<16x16xf32> -> vector<16x16xf32>
    %c0_16 = arith.constant 0 : index
    %c0_17 = arith.constant 0 : index
    %c0_18 = arith.constant 0 : index
    %13 = vector.load %arg6[%c0_16, %c0_17, %c0_18] : memref<2x32x16xf32, #tpu.memory_space<vmem>>, vector<1x32x16xf32>
    %14 = vector.shape_cast %13 : vector<1x32x16xf32> to vector<32x16xf32>
    %cst_19 = arith.constant dense<0.000000e+00> : vector<16x16xf32>
    %15 = tpu.matmul %5, %14, %cst_19 {dimension_numbers = #tpu.dot_dimension_numbers<[1], [0], [0], [1], [0, 0, 1, 1], [], []>} : vector<16x32xf32>, vector<32x16xf32>, vector<16x16xf32> -> vector<16x16xf32>
    %16 = vector.shape_cast %9 : vector<16x16xf32> to vector<2x8x16xf32>
    %17 = vector.shape_cast %12 : vector<16x16xf32> to vector<2x8x16xf32>
    %18 = vector.shape_cast %15 : vector<16x16xf32> to vector<2x8x16xf32>
    "tpu.trace_start"() <{level = 10 : i32, message = "bqd,bkd->bqk"}> : () -> ()
    %cst_20 = arith.constant dense<0.000000e+00> : vector<2x8x8xf32>
    %19 = tpu.matmul %16, %17, %cst_20 {dimension_numbers = #tpu.dot_dimension_numbers<[2], [2], [1], [1], [0, 0, 0, 1, 1, 1], [0], [0]>} : vector<2x8x16xf32>, vector<2x8x16xf32>, vector<2x8x8xf32> -> vector<2x8x8xf32>
    "tpu.trace_stop"() : () -> ()
    %cst_21 = arith.constant dense<0xFF800000> : vector<2x8xf32>
    %20 = vector.multi_reduction <maximumf>, %19, %cst_21 [2] : vector<2x8x8xf32> to vector<2x8xf32>
    %21 = vector.shape_cast %20 : vector<2x8xf32> to vector<2x8x1xf32>
    %22 = vector.broadcast %21 : vector<2x8x1xf32> to vector<2x8x8xf32>
    %23 = arith.subf %19, %22 : vector<2x8x8xf32>
    %24 = math.exp %23 : vector<2x8x8xf32>
    %cst_22 = arith.constant dense<0.000000e+00> : vector<2x8xf32>
    %25 = vector.multi_reduction <add>, %24, %cst_22 [2] : vector<2x8x8xf32> to vector<2x8xf32>
    %26 = vector.shape_cast %25 : vector<2x8xf32> to vector<2x8x1xf32>
    %27 = tpu.reciprocal %26 : vector<2x8x1xf32> -> vector<2x8x1xf32>
    %28 = vector.broadcast %27 : vector<2x8x1xf32> to vector<2x8x8xf32>
    %29 = arith.mulf %24, %28 : vector<2x8x8xf32>
    %c0_23 = arith.constant 0 : index
    %c0_24 = arith.constant 0 : index
    %c0_25 = arith.constant 0 : index
    %c0_26 = arith.constant 0 : index
    %30 = vector.load %arg12[%c0_23, %c0_24, %c0_25, %c0_26] : memref<2x2x8x8xf32, #tpu.memory_space<vmem>>, vector<1x2x8x8xf32>
    %31 = vector.shape_cast %30 : vector<1x2x8x8xf32> to vector<2x8x8xf32>
    %32 = vector.shape_cast %29 : vector<2x8x8xf32> to vector<1x2x8x8xf32>
    tpu.vector_store %arg12[%c0_23, %c0_24, %c0_25, %c0_26], %32 {strides = array<i32>} : memref<2x2x8x8xf32, #tpu.memory_space<vmem>>, vector<1x2x8x8xf32>,
    "tpu.trace_start"() <{level = 10 : i32, message = "bqk,bkd->bqd"}> : () -> ()
    %cst_27 = arith.constant dense<0.000000e+00> : vector<2x8x16xf32>
    %33 = tpu.matmul %29, %18, %cst_27 {dimension_numbers = #tpu.dot_dimension_numbers<[2], [1], [1], [2], [0, 0, 0, 1, 1, 2], [0], [0]>} : vector<2x8x8xf32>, vector<2x8x16xf32>, vector<2x8x16xf32> -> vector<2x8x16xf32>
    "tpu.trace_stop"() : () -> ()
    %34 = vector.shape_cast %33 : vector<2x8x16xf32> to vector<16x16xf32>
    %c0_28 = arith.constant 0 : index
    %c0_29 = arith.constant 0 : index
    %c0_30 = arith.constant 0 : index
    %35 = vector.load %arg7[%c0_28, %c0_29, %c0_30] : memref<2x16x32xf32, #tpu.memory_space<vmem>>, vector<1x16x32xf32>
    %36 = vector.shape_cast %35 : vector<1x16x32xf32> to vector<16x32xf32>
    %cst_31 = arith.constant dense<0.000000e+00> : vector<16x32xf32>
    %37 = tpu.matmul %34, %36, %cst_31 {dimension_numbers = #tpu.dot_dimension_numbers<[1], [0], [0], [1], [0, 0, 1, 1], [], []>} : vector<16x16xf32>, vector<16x32xf32>, vector<16x32xf32> -> vector<16x32xf32>
    %38 = arith.addf %6, %37 : vector<16x32xf32>
    %c1 = arith.constant 1 : index
    %c0_32 = arith.constant 0 : index
    %c0_33 = arith.constant 0 : index
    %39 = vector.load %arg4[%c1, %c0_32, %c0_33] : memref<2x32x16xf32, #tpu.memory_space<vmem>>, vector<1x32x16xf32>
    %40 = vector.shape_cast %39 : vector<1x32x16xf32> to vector<32x16xf32>
    %cst_34 = arith.constant dense<0.000000e+00> : vector<16x16xf32>
    %41 = tpu.matmul %1, %40, %cst_34 {dimension_numbers = #tpu.dot_dimension_numbers<[1], [0], [0], [1], [0, 0, 1, 1], [], []>} : vector<16x32xf32>, vector<32x16xf32>, vector<16x16xf32> -> vector<16x16xf32>
    %c1_35 = arith.constant 1 : index
    %c0_36 = arith.constant 0 : index
    %c0_37 = arith.constant 0 : index
    %42 = vector.load %arg5[%c1_35, %c0_36, %c0_37] : memref<2x32x16xf32, #tpu.memory_space<vmem>>, vector<1x32x16xf32>
    %43 = vector.shape_cast %42 : vector<1x32x16xf32> to vector<32x16xf32>
    %cst_38 = arith.constant dense<0.000000e+00> : vector<16x16xf32>
    %44 = tpu.matmul %3, %43, %cst_38 {dimension_numbers = #tpu.dot_dimension_numbers<[1], [0], [0], [1], [0, 0, 1, 1], [], []>} : vector<16x32xf32>, vector<32x16xf32>, vector<16x16xf32> -> vector<16x16xf32>
    %c1_39 = arith.constant 1 : index
    %c0_40 = arith.constant 0 : index
    %c0_41 = arith.constant 0 : index
    %45 = vector.load %arg6[%c1_39, %c0_40, %c0_41] : memref<2x32x16xf32, #tpu.memory_space<vmem>>, vector<1x32x16xf32>
    %46 = vector.shape_cast %45 : vector<1x32x16xf32> to vector<32x16xf32>
    %cst_42 = arith.constant dense<0.000000e+00> : vector<16x16xf32>
    %47 = tpu.matmul %5, %46, %cst_42 {dimension_numbers = #tpu.dot_dimension_numbers<[1], [0], [0], [1], [0, 0, 1, 1], [], []>} : vector<16x32xf32>, vector<32x16xf32>, vector<16x16xf32> -> vector<16x16xf32>
    %48 = vector.shape_cast %41 : vector<16x16xf32> to vector<2x8x16xf32>
    %49 = vector.shape_cast %44 : vector<16x16xf32> to vector<2x8x16xf32>
    %50 = vector.shape_cast %47 : vector<16x16xf32> to vector<2x8x16xf32>
    "tpu.trace_start"() <{level = 10 : i32, message = "bqd,bkd->bqk"}> : () -> ()
    %cst_43 = arith.constant dense<0.000000e+00> : vector<2x8x8xf32>
    %51 = tpu.matmul %48, %49, %cst_43 {dimension_numbers = #tpu.dot_dimension_numbers<[2], [2], [1], [1], [0, 0, 0, 1, 1, 1], [0], [0]>} : vector<2x8x16xf32>, vector<2x8x16xf32>, vector<2x8x8xf32> -> vector<2x8x8xf32>
    "tpu.trace_stop"() : () -> ()
    %cst_44 = arith.constant dense<0xFF800000> : vector<2x8xf32>
    %52 = vector.multi_reduction <maximumf>, %51, %cst_44 [2] : vector<2x8x8xf32> to vector<2x8xf32>
    %53 = vector.shape_cast %52 : vector<2x8xf32> to vector<2x8x1xf32>
    %54 = vector.broadcast %53 : vector<2x8x1xf32> to vector<2x8x8xf32>
    %55 = arith.subf %51, %54 : vector<2x8x8xf32>
    %56 = math.exp %55 : vector<2x8x8xf32>
    %cst_45 = arith.constant dense<0.000000e+00> : vector<2x8xf32>
    %57 = vector.multi_reduction <add>, %56, %cst_45 [2] : vector<2x8x8xf32> to vector<2x8xf32>
    %58 = vector.shape_cast %57 : vector<2x8xf32> to vector<2x8x1xf32>
    %59 = tpu.reciprocal %58 : vector<2x8x1xf32> -> vector<2x8x1xf32>
    %60 = vector.broadcast %59 : vector<2x8x1xf32> to vector<2x8x8xf32>
    %61 = arith.mulf %56, %60 : vector<2x8x8xf32>
    %c1_46 = arith.constant 1 : index
    %c0_47 = arith.constant 0 : index
    %c0_48 = arith.constant 0 : index
    %c0_49 = arith.constant 0 : index
    %62 = vector.load %arg12[%c1_46, %c0_47, %c0_48, %c0_49] : memref<2x2x8x8xf32, #tpu.memory_space<vmem>>, vector<1x2x8x8xf32>
    %63 = vector.shape_cast %62 : vector<1x2x8x8xf32> to vector<2x8x8xf32>
    %64 = vector.shape_cast %61 : vector<2x8x8xf32> to vector<1x2x8x8xf32>
    tpu.vector_store %arg12[%c1_46, %c0_47, %c0_48, %c0_49], %64 {strides = array<i32>} : memref<2x2x8x8xf32, #tpu.memory_space<vmem>>, vector<1x2x8x8xf32>,
    "tpu.trace_start"() <{level = 10 : i32, message = "bqk,bkd->bqd"}> : () -> ()
    %cst_50 = arith.constant dense<0.000000e+00> : vector<2x8x16xf32>
    %65 = tpu.matmul %61, %50, %cst_50 {dimension_numbers = #tpu.dot_dimension_numbers<[2], [1], [1], [2], [0, 0, 0, 1, 1, 2], [0], [0]>} : vector<2x8x8xf32>, vector<2x8x16xf32>, vector<2x8x16xf32> -> vector<2x8x16xf32>
    "tpu.trace_stop"() : () -> ()
    %66 = vector.shape_cast %65 : vector<2x8x16xf32> to vector<16x16xf32>
    %c1_51 = arith.constant 1 : index
    %c0_52 = arith.constant 0 : index
    %c0_53 = arith.constant 0 : index
    %67 = vector.load %arg7[%c1_51, %c0_52, %c0_53] : memref<2x16x32xf32, #tpu.memory_space<vmem>>, vector<1x16x32xf32>
    %68 = vector.shape_cast %67 : vector<1x16x32xf32> to vector<16x32xf32>
    %cst_54 = arith.constant dense<0.000000e+00> : vector<16x32xf32>
    %69 = tpu.matmul %66, %68, %cst_54 {dimension_numbers = #tpu.dot_dimension_numbers<[1], [0], [0], [1], [0, 0, 1, 1], [], []>} : vector<16x16xf32>, vector<16x32xf32>, vector<16x32xf32> -> vector<16x32xf32>
    %70 = arith.addf %38, %69 : vector<16x32xf32>
    %c0_55 = arith.constant 0 : index
    %c0_56 = arith.constant 0 : index
    %71 = vector.load %arg8[%c0_55, %c0_56] : memref<1x32xf32, #tpu.memory_space<vmem>>, vector<1x32xf32>
    %72 = vector.broadcast %71 : vector<1x32xf32> to vector<16x32xf32>
    %73 = arith.addf %70, %72 : vector<16x32xf32>
    %74 = arith.addf %73, %1 : vector<16x32xf32>
    %cst_57 = arith.constant dense<0.000000e+00> : vector<16xf32>
    %75 = vector.multi_reduction <add>, %74, %cst_57 [1] : vector<16x32xf32> to vector<16xf32>
    %76 = vector.shape_cast %75 : vector<16xf32> to vector<16x1xf32>
    %cst_58 = arith.constant 3.200000e+01 : f32
    %77 = vector.broadcast %cst_58 : f32 to vector<16x1xf32>
    %78 = arith.divf %76, %77 : vector<16x1xf32>
    %79 = vector.broadcast %78 : vector<16x1xf32> to vector<16x32xf32>
    %80 = arith.subf %74, %79 : vector<16x32xf32>
    %81 = arith.mulf %80, %80 : vector<16x32xf32>
    %cst_59 = arith.constant dense<0.000000e+00> : vector<16xf32>
    %82 = vector.multi_reduction <add>, %81, %cst_59 [1] : vector<16x32xf32> to vector<16xf32>
    %83 = vector.shape_cast %82 : vector<16xf32> to vector<16x1xf32>
    %cst_60 = arith.constant 3.200000e+01 : f32
    %84 = vector.broadcast %cst_60 : f32 to vector<16x1xf32>
    %85 = arith.divf %83, %84 : vector<16x1xf32>
    %86 = vector.broadcast %78 : vector<16x1xf32> to vector<16x32xf32>
    %87 = arith.subf %74, %86 : vector<16x32xf32>
    %cst_61 = arith.constant 9.99999974E-6 : f32
    %88 = vector.broadcast %cst_61 : f32 to vector<16x1xf32>
    %89 = arith.addf %85, %88 : vector<16x1xf32>
    %90 = math.rsqrt %89 : vector<16x1xf32>
    %91 = vector.broadcast %90 : vector<16x1xf32> to vector<16x32xf32>
    %92 = arith.mulf %87, %91 : vector<16x32xf32>
    %c0_62 = arith.constant 0 : index
    %c0_63 = arith.constant 0 : index
    %93 = vector.load %arg9[%c0_62, %c0_63] : memref<1x32xf32, #tpu.memory_space<vmem>>, vector<1x32xf32>
    %94 = vector.broadcast %93 : vector<1x32xf32> to vector<16x32xf32>
    %95 = arith.mulf %92, %94 : vector<16x32xf32>
    %c0_64 = arith.constant 0 : index
    %c0_65 = arith.constant 0 : index
    %96 = vector.load %arg10[%c0_64, %c0_65] : memref<1x32xf32, #tpu.memory_space<vmem>>, vector<1x32xf32>
    %97 = vector.broadcast %96 : vector<1x32xf32> to vector<16x32xf32>
    %98 = arith.addf %95, %97 : vector<16x32xf32>
    %99 = vector.shape_cast %98 : vector<16x32xf32> to vector<2x8x32xf32>
    %c0_66 = arith.constant 0 : index
    %c0_67 = arith.constant 0 : index
    %c0_68 = arith.constant 0 : index
    %100 = vector.load %arg11[%c0_66, %c0_67, %c0_68] : memref<2x8x32xf32, #tpu.memory_space<vmem>>, vector<2x8x32xf32>
    tpu.vector_store %arg11[%c0_66, %c0_67, %c0_68], %99 {strides = array<i32>} : memref<2x8x32xf32, #tpu.memory_space<vmem>>, vector<2x8x32xf32>,
    return
  }
  func.func @transform_0(%arg0: i32) -> (i32, i32, i32) {
    %c0_i32 = arith.constant 0 : i32
    %c0_i32_0 = arith.constant 0 : i32
    %c0_i32_1 = arith.constant 0 : i32
    return %arg0, %c0_i32, %c0_i32_0 : i32, i32, i32
  }
  func.func @transform_1(%arg0: i32) -> (i32, i32, i32) {
    %c0_i32 = arith.constant 0 : i32
    %c0_i32_0 = arith.constant 0 : i32
    %c0_i32_1 = arith.constant 0 : i32
    return %arg0, %c0_i32, %c0_i32_0 : i32, i32, i32
  }
  func.func @transform_2(%arg0: i32) -> (i32, i32, i32) {
    %c0_i32 = arith.constant 0 : i32
    %c0_i32_0 = arith.constant 0 : i32
    %c0_i32_1 = arith.constant 0 : i32
    return %arg0, %c0_i32, %c0_i32_0 : i32, i32, i32
  }
  func.func @transform_3(%arg0: i32) -> (i32, i32, i32) {
    %c0_i32 = arith.constant 0 : i32
    %c0_i32_0 = arith.constant 0 : i32
    %c0_i32_1 = arith.constant 0 : i32
    %c0_i32_2 = arith.constant 0 : i32
    return %c0_i32, %c0_i32_0, %c0_i32_1 : i32, i32, i32
  }
  func.func @transform_4(%arg0: i32) -> (i32, i32, i32) {
    %c0_i32 = arith.constant 0 : i32
    %c0_i32_0 = arith.constant 0 : i32
    %c0_i32_1 = arith.constant 0 : i32
    %c0_i32_2 = arith.constant 0 : i32
    return %c0_i32, %c0_i32_0, %c0_i32_1 : i32, i32, i32
  }
  func.func @transform_5(%arg0: i32) -> (i32, i32, i32) {
    %c0_i32 = arith.constant 0 : i32
    %c0_i32_0 = arith.constant 0 : i32
    %c0_i32_1 = arith.constant 0 : i32
    %c0_i32_2 = arith.constant 0 : i32
    return %c0_i32, %c0_i32_0, %c0_i32_1 : i32, i32, i32
  }
  func.func @transform_6(%arg0: i32) -> (i32, i32, i32) {
    %c0_i32 = arith.constant 0 : i32
    %c0_i32_0 = arith.constant 0 : i32
    %c0_i32_1 = arith.constant 0 : i32
    %c0_i32_2 = arith.constant 0 : i32
    return %c0_i32, %c0_i32_0, %c0_i32_1 : i32, i32, i32
  }
  func.func @transform_7(%arg0: i32) -> (i32, i32) {
    %c0_i32 = arith.constant 0 : i32
    %c0_i32_0 = arith.constant 0 : i32
    %c0_i32_1 = arith.constant 0 : i32
    return %c0_i32, %c0_i32_0 : i32, i32
  }
  func.func @transform_8(%arg0: i32) -> (i32, i32) {
    %c0_i32 = arith.constant 0 : i32
    %c0_i32_0 = arith.constant 0 : i32
    %c0_i32_1 = arith.constant 0 : i32
    return %c0_i32, %c0_i32_0 : i32, i32
  }
  func.func @transform_9(%arg0: i32) -> (i32, i32) {
    %c0_i32 = arith.constant 0 : i32
    %c0_i32_0 = arith.constant 0 : i32
    %c0_i32_1 = arith.constant 0 : i32
    return %c0_i32, %c0_i32_0 : i32, i32
  }
  func.func @transform_10(%arg0: i32) -> (i32, i32, i32) {
    %c0_i32 = arith.constant 0 : i32
    %c0_i32_0 = arith.constant 0 : i32
    %c0_i32_1 = arith.constant 0 : i32
    return %arg0, %c0_i32, %c0_i32_0 : i32, i32, i32
  }
  func.func @transform_11(%arg0: i32) -> (i32, i32, i32, i32) {
    %c0_i32 = arith.constant 0 : i32
    %c0_i32_0 = arith.constant 0 : i32
    %c0_i32_1 = arith.constant 0 : i32
    %c0_i32_2 = arith.constant 0 : i32
    return %c0_i32, %arg0, %c0_i32_0, %c0_i32_1 : i32, i32, i32, i32
  }
}

</mosaic_0001>

<bundles_post_ra>
// kernel: tpu_custom_call.1
= control target key start
LH: loop header
LB: loop body
LE: loop exit
PB: predicated region body
PF: predicated region fallthrough
CT: control target
= control target key end

     0   :  { %17 = vsyncpa [#allocation3], 0  ;;  %vm49_vm0 = vcmask 261120   ;;  %s2107_s0 = inlined_call_operand.vmem [shape: f32[2,8,32], index: 0, kind: input, shape index: {}]   ;;  %s2108_s1 = inlined_call_operand.vmem [shape: f32[2,8,32], index: 1, kind: input, shape index: {}]   ;;  %s2109_s2 = inlined_call_operand.vmem [shape: f32[2,8,32], index: 2, kind: input, shape index: {}]   ;;  %s2110_s3 = inlined_call_operand.vmem [shape: f32[2,32,16], index: 3, kind: input, shape index: {}]   ;;  %s2111_s4 = inlined_call_operand.vmem [shape: f32[2,32,16], index: 4, kind: input, shape index: {}]   ;;  %s2112_s5 = inlined_call_operand.vmem [shape: f32[2,32,16], index: 5, kind: input, shape index: {}]   ;;  %s2113_s6 = inlined_call_operand.vmem [shape: f32[2,16,32], index: 6, kind: input, shape index: {}]   ;;  %s2114_s7 = inlined_call_operand.vmem [shape: f32[1,32], index: 7, kind: input, shape index: {}]   ;;  %s2115_s8 = inlined_call_operand.vmem [shape: f32[1,32], index: 8, kind: input, shape index: {}]   ;;  %s2116_s9 = inlined_call_operand.vmem [shape: f32[1,32], index: 9, kind: input, shape index: {}]   ;;  %s2117_s10 = inlined_call_operand.hbm [shape: f32[2,8,32], index: 10, kind: output, shape index: {0}]   ;;  %s2118_s11 = inlined_call_operand.hbm [shape: f32[2,2,8,8], index: 11, kind: output, shape index: {1}]  }
   0x1   :  { %v131_v0 = vld [vmem:[%s2111_s4] sm:$0xff]  ;;  %v132_v1 = vld [vmem:[%s2111_s4 + $0x8] sm:$0xff]  ;;  %v133_v5 = vld [vmem:[%s2111_s4 + $0x10] sm:$0xff] }
   0x2   :  { %v45_v2 = vld [vmem:[%s2110_s3] sm:$0xff]  ;;  %v1678_v3 = vpack.c.bf16 %v132_v1, %v131_v0  ;;  %v46_v4 = vld [vmem:[%s2110_s3 + $0x8] sm:$0xff]  ;;  %v134_v6 = vld [vmem:[%s2111_s4 + $0x18] sm:$0xff] }
   0x3   :  { %v1670_v7 = vpack.c.bf16 %v46_v4, %v45_v2  ;;  %v1682_v8 = vpack.c.bf16 %v134_v6, %v133_v5  ;;  %v47_v9 = vld [vmem:[%s2110_s3 + $0x10] sm:$0xff]  ;;  %v48_v10 = vld [vmem:[%s2110_s3 + $0x18] sm:$0xff]  ;;  %v1895_v11 = vld [vmem:[%s2108_s1] sm:$0xff] }
   0x4   :  { %1679 = vmatprep.subr.bf16.mxu1 %v1678_v3  ;;  %v1674_v12 = vpack.c.bf16 %v48_v10, %v47_v9  ;;  %1569 = vmatprep.mubr.msk.f32.mxu1 %vm49_vm0, %v1895_v11  ;;  %v1902_v13 = vld [vmem:[%s2107_s0] sm:$0xff] }
   0x5   :  { %1681 = vmatpush3.bf16.msra.mxu1 %v1678_v3  ;;  %1671 = vmatprep.subr.bf16.mxu0 %v1670_v7 }
   0x6   :  { %18 = vsyncpa [#allocation5], 0  ;;  %1673 = vmatpush3.bf16.msra.mxu0 %v1670_v7  ;;  %1683 = vmatprep.subr.bf16.mxu1 %v1682_v8  ;;  %v1909_v14 = vld [vmem:[%s2108_s1 + $0x8] sm:$0xff]  ;;  %v1802_v16 = vmov 0.0   ;;  %vm1803_vm1 = vmmov 0   ;;  %vm301_vm2 = vcmask 130048  }
   0x7   :  { %1675 = vmatprep.subr.bf16.mxu0 %v1674_v12  ;;  %1558 = vmatprep.mubr.msk.f32.mxu0 %vm49_vm0, %v1902_v13  ;;  %v1914_v15 = vld [vmem:[%s2107_s0 + $0x8] sm:$0xff]  ;;  %v216_v21 = vld [vmem:[%s2112_s5] sm:$0xff]  ;;  %v218_v23 = vld [vmem:[%s2112_s5 + $0x10] sm:$0xff]  ;;  %vm454_vm3 = vcmask 64512  }
   0x8   :  { %v217_v22 = vld [vmem:[%s2112_s5 + $0x8] sm:$0xff]  ;;  %v219_v25 = vld [vmem:[%s2112_s5 + $0x18] sm:$0xff]  ;;  %v43_v26 = vld [vmem:[%s2109_s2] sm:$0xff] }
   0x9   :  { %1685 = vmatpush3.bf16.msra.mxu1 %v1682_v8  ;;  %v1686_v24 = vpack.c.bf16 %v217_v22, %v216_v21  ;;  %v1690_v27 = vpack.c.bf16 %v219_v25, %v218_v23  ;;  %v1952_v28 = vld [vmem:[%s2109_s2 + $0x8] sm:$0xff]  ;;  %v1457_v47 = vld [vmem:[%s2110_s3 + $0x20] sm:$0xff]  ;;  %v1459_v50 = vld [vmem:[%s2110_s3 + $0x30] sm:$0xff] }
   0xa   :  { %1677 = vmatpush3.bf16.msra.mxu0 %v1674_v12  ;;  %1583 = vmatprep.subr.mxu1 %v1802_v16  ;;  %v1458_v48 = vld [vmem:[%s2110_s3 + $0x28] sm:$0xff]  ;;  %v1460_v51 = vld [vmem:[%s2110_s3 + $0x38] sm:$0xff]  ;;  %v1463_v55 = vld [vmem:[%s2111_s4 + $0x20] sm:$0xff] }
   0xb   :  { %1687 = vmatprep.subr.bf16.mxu0 %v1686_v24  ;;  %v1694_v49 = vpack.c.bf16 %v1458_v48, %v1457_v47  ;;  %v1698_v52 = vpack.c.bf16 %v1460_v51, %v1459_v50  ;;  %v1464_v56 = vld [vmem:[%s2111_s4 + $0x28] sm:$0xff]  ;;  %v1465_v60 = vld [vmem:[%s2111_s4 + $0x30] sm:$0xff]  ;;  %v1466_v61 = vld [vmem:[%s2111_s4 + $0x38] sm:$0xff] }
   0xc   :  { %1570 = vmatmul.mubr.msk.f32.vlgmr.msra.gmra.mrb[0].mxu1 %vm49_vm0, %v1909_v14  ;;  %v1702_v59 = vpack.c.bf16 %v1464_v56, %v1463_v55  ;;  %v1706_v0 = vpack.c.bf16 %v1466_v61, %v1465_v60  ;;  %v1469_v9 = vld [vmem:[%s2112_s5 + $0x20] sm:$0xff]  ;;  %v1470_v10 = vld [vmem:[%s2112_s5 + $0x28] sm:$0xff] }
   0xd   :  { %1559 = vmatmul.mubr.msk.f32.vlgmr.msra.gmra.mrb[0].mxu0 %vm49_vm0, %v1914_v15  ;;  %1585 = vmatprep.mubr.msk.f32.mxu1 %vm1803_vm1, %v1802_v16  ;;  %v1710_v12 = vpack.c.bf16 %v1470_v10, %v1469_v9  ;;  %v1487_v51 = vld [vmem:[%s2114_s7] ss:$0 sm:$0xff] }
   0xe   :  { %1580 = vmatprep.mubr.msk.f32.mxu0 %vm49_vm0, %v43_v26  ;;  %1689 = vmatpush3.bf16.msra.mxu0 %v1686_v24 }
   0xf   :  { %1691 = vmatprep.subr.bf16.mxu0 %v1690_v27 }
  0x12   :  { %1693 = vmatpush3.bf16.msra.mxu0 %v1690_v27 }
  0x13   :  { %1695 = vmatprep.subr.bf16.mxu0 %v1694_v49 }
  0x15   :  { %1581 = vmatmul.mubr.msk.f32.vlgmr.msra.gmra.mrb[2].mxu0 %vm49_vm0, %v1952_v28 }
  0x16   :  { %1611 = vmatprep.mubr.msk.f32.mxu0 %vm49_vm0, %v1902_v13  ;;  %1697 = vmatpush3.bf16.msra.mxu0 %v1694_v49 }
  0x17   :  { %1699 = vmatprep.subr.bf16.mxu0 %v1698_v52 }
  0x1a   :  { %1701 = vmatpush3.bf16.msra.mxu0 %v1698_v52 }
  0x1b   :  { %1711 = vmatprep.subr.bf16.mxu0 %v1710_v12 }
  0x1d   :  { %1612 = vmatmul.mubr.msk.f32.vlgmr.msra.gmra.mrb[4].mxu0 %vm49_vm0, %v1914_v15 }
  0x1e   :  { %1633 = vmatprep.mubr.msk.f32.mxu0 %vm49_vm0, %v43_v26  ;;  %1713 = vmatpush3.bf16.msra.mxu0 %v1710_v12 }
  0xdf   :  { %v1571_v17 = vpop.f32.mrb[0].mxu1 }
  0xe0   :  { %v207_v18 = vpop.f32.mrb[1].mxu1  ;;  %v1560_v19 = vpop.f32.mrb[0].mxu0 }
  0xe1   :  { %1584 = vmatpush3.xpose.msk.msra.mxu1 %vm301_vm2, %v207_v18  ;;  %v122_v20 = vpop.f32.mrb[1].mxu0 }
  0xe2   :  { %1588 = vmatprep.subr.mxu1 %v1802_v16 }
  0xe4   :  { %1586 = vmatmul.mubr.msk.f32.vlgmr.msra.gmra.mrb[2].mxu1 %vm301_vm2, %v122_v20 }
  0xe5   :  { %1589 = vmatpush3.xpose.msk.msra.mxu1 %vm301_vm2, %v1571_v17  ;;  %1590 = vmatprep.mubr.msk.f32.mxu1 %vm1803_vm1, %v1802_v16 }
  0xe6   :  { %1593 = vmatprep.subr.mxu1 %v1802_v16 }
  0xe8   :  { %1591 = vmatmul.mubr.msk.f32.vlgmr.msra.gmra.mrb[4].mxu1 %vm301_vm2, %v1560_v19  ;;  %v1582_v45 = vpop.f32.mrb[2].mxu0 }
  0xe9   :  { %1595 = vmatprep.mubr.msk.f32.mxu1 %vm1803_vm1, %v1802_v16  ;;  %v292_v46 = vpop.f32.mrb[3].mxu0 }
  0xea   :  { %1594 = vmatpush3.msra.mxu1 %v292_v46 }
  0xeb   :  { %1598 = vmatprep.subr.mxu1 %v1802_v16 }
  0xf0   :  { %v1613_v1 = vpop.f32.mrb[4].mxu0 }
  0xf1   :  { %v698_v2 = vpop.f32.mrb[5].mxu0 }
 0x1b7   :  { %v374_v29 = vpop.f32.mrb[2].mxu1 }
 0x1b8   :  { %v1587_v30 = vpop.f32.mrb[3].mxu1  ;;  %v455_v31 = vsel %vm454_vm3, %v374_v29, -inf }
 0x1b9   :  { %456 = vmax.xlane.f32.xlu0 %v455_v31 }
 0x1bb   :  { %v450_v32 = vpop.f32.mrb[4].mxu1 }
 0x1bc   :  { %v1592_v33 = vpop.f32.mrb[5].mxu1  ;;  %v458_v34 = vsel %vm454_vm3, %v450_v32, -inf }
 0x1bd   :  { %459 = vmax.xlane.f32.xlu0 %v458_v34 }
 0x246   :  { %v457_v35 = vpop.xlane.xlu0 %456 }
 0x247   :  { %v461_v36 = vsub.f32 %v374_v29, %v457_v35 }
 0x249   :  { %v463_v37 = vmul.f32 1.442695, %v461_v36 }
 0x24a   :  { %v460_v38 = vpop.xlane.xlu0 %459 }
 0x24b   :  { %1734 = vpow2.f32 %v463_v37  ;;  %v462_v39 = vsub.f32 %v450_v32, %v460_v38 }
 0x24d   :  { %v465_v40 = vmul.f32 1.442695, %v462_v39 }
 0x24f   :  { %1736 = vpow2.f32 %v465_v40 }
 0x255   :  { %v1735_v41 = vpop.eup %1734 }
 0x256   :  { %v467_v42 = vsel %vm454_vm3, %v1735_v41, 0.0 }
 0x257   :  { %468 = vadd.xlane.f32.xlu1 %v467_v42  ;;  %v1482_v42 = vld [vmem:[%s2113_s6 + $0x18] sm:$0xff] }
 0x259   :  { %v1737_v43 = vpop.eup %1736 }
 0x25a   :  { %v470_v44 = vsel %vm454_vm3, %v1737_v43, 0.0 }
 0x25b   :  { %471 = vadd.xlane.f32.xlu1 %v470_v44  ;;  %v625_v44 = vld [vmem:[%s2113_s6] sm:$0xff] }
 0x2e4   :  { %v469_v53 = vpop.xlane.xlu1 %468 }
 0x2e5   :  { %1738 = vrcp.f32 %v469_v53 }
 0x2e8   :  { %v472_v54 = vpop.xlane.xlu1 %471 }
 0x2e9   :  { %1740 = vrcp.f32 %v472_v54 }
 0x2ef   :  { %v1739_v57 = vpop.eup %1738 }
 0x2f0   :  { %v475_v58 = vmul.f32 %v1739_v57, %v1735_v41  ;;  %v1481_v41 = vld [vmem:[%s2113_s6 + $0x10] sm:$0xff] }
 0x2f2   :  { %477 = vst.msk [vmem:[#allocation4] sm:$0xff] %vm454_vm3, %v475_v58  ;;  %1596 = vmatmul.mubr.msk.f32.vlgmr.msra.gmra.mrb[6].mxu1 %vm454_vm3, %v475_v58 }
 0x2f3   :  { %v1741_v62 = vpop.eup %1740  ;;  %1599 = vmatpush3.msra.mxu1 %v1582_v45  ;;  %1600 = vmatprep.mubr.msk.f32.mxu1 %vm1803_vm1, %v1802_v16  ;;  %v626_v45 = vld [vmem:[%s2113_s6 + $0x8] sm:$0xff]  ;;  %s1804_s6 = smov [#allocation4]  }
 0x2f4   :  { %v476_v63 = vmul.f32 %v1741_v62, %v1737_v43  ;;  %1703 = vmatprep.subr.bf16.mxu1 %v1702_v59  ;;  %v1718_v43 = vpack.c.bf16 %v1482_v42, %v1481_v41  ;;  %v1722_v46 = vpack.c.bf16 %v626_v45, %v625_v44  ;;  %s1430_s7 = sshll.u32 %s1804_s6, 4  ;;  %s1431_s7 = int_to_ptr.vmem [resolvable:$true] %s1430_s7 }
 0x2f5   :  { %s1754_s21 = scalar_lea.vmem %s1431_s7, 512  ;;  %p1759_p1 = scmp.lt.s32.totalorder %s1431_s7, %s1431_s7 }
 0x2f6   :  { %478 = vst.msk [vmem:[#allocation4 + $0x8] sm:$0xff] %vm454_vm3, %v476_v63  ;;  %1601 = vmatmul.mubr.msk.f32.vlgmr.msra.gmra.mrb[8].mxu1 %vm454_vm3, %v476_v63  ;;  %p1755_p0 = scmp.ne.s32.totalorder %s1431_s7, %s1754_s21  ;;  %p1760_p2 = scmp.lt.s32.totalorder %s1754_s21, %s1754_s21 }
 0x2f7   :  { %1705 = vmatpush3.bf16.msra.mxu1 %v1702_v59  ;;  %1622 = vmatprep.mubr.msk.f32.mxu1 %vm49_vm0, %v1895_v11  ;;  %v1471_v11 = vld [vmem:[%s2112_s5 + $0x30] sm:$0xff] }
 0x2f8   :  { %1707 = vmatprep.subr.bf16.mxu1 %v1706_v0  ;;  %p1761_p3 = por %p1760_p2, %p1759_p1 }
 0x2fa   :  { %p1762_p4 = pnand %p1761_p3, %p1755_p0 }
 0x2fb   :  { %1709 = vmatpush3.bf16.msra.mxu1 %v1706_v0 }
 0x2fc   :  { %1636 = vmatprep.subr.mxu1 %v1802_v16 }
 0x2fe   :  { %1623 = vmatmul.mubr.msk.f32.vlgmr.msra.gmra.mrb[10].mxu1 %vm49_vm0, %v1909_v14  ;;  %v1472_v14 = vld [vmem:[%s2112_s5 + $0x38] sm:$0xff] }
 0x2ff   :  { %1638 = vmatprep.mubr.msk.f32.mxu1 %vm1803_vm1, %v1802_v16  ;;  %v1714_v17 = vpack.c.bf16 %v1472_v14, %v1471_v11 }
 0x301   :  { %1715 = vmatprep.subr.bf16.mxu0 %v1714_v17 }
 0x302   :  { %1717 = vmatpush3.bf16.msra.mxu0 %v1714_v17 }
 0x303   :  { %1646 = vmatprep.subr.mxu0 %v1802_v16 }
 0x305   :  { %1634 = vmatmul.mubr.msk.f32.vlgmr.msra.gmra.mrb[6].mxu0 %vm49_vm0, %v1952_v28 }
 0x306   :  { %1648 = vmatprep.mubr.msk.f32.mxu0 %vm1803_vm1, %v1802_v16 }
 0x3c5   :  { %v2003_v3 = vpop.f32.mrb[6].mxu1 }
 0x3c6   :  { %v1597_v4 = vpop.f32.mrb[7].mxu1 }
 0x3c9   :  { %v2005_v5 = vpop.f32.mrb[8].mxu1 }
 0x3ca   :  { %v1602_v6 = vpop.f32.mrb[9].mxu1 }
 0x3d1   :  { %v1624_v7 = vpop.f32.mrb[10].mxu1 }
 0x3d2   :  { %v778_v8 = vpop.f32.mrb[11].mxu1 }
 0x3d3   :  { %1637 = vmatpush3.xpose.msk.msra.mxu1 %vm301_vm2, %v778_v8 }
 0x3d4   :  { %1641 = vmatprep.subr.mxu1 %v1802_v16 }
 0x3d6   :  { %1639 = vmatmul.mubr.msk.f32.vlgmr.msra.gmra.mrb[12].mxu1 %vm301_vm2, %v698_v2 }
 0x3d7   :  { %1642 = vmatpush3.xpose.msk.msra.mxu1 %vm301_vm2, %v1624_v7  ;;  %1643 = vmatprep.mubr.msk.f32.mxu1 %vm1803_vm1, %v1802_v16 }
 0x3d8   :  { %1651 = vmatprep.subr.mxu1 %v1802_v16  ;;  %v1635_v33 = vpop.f32.mrb[6].mxu0 }
 0x3d9   :  { %v858_v34 = vpop.f32.mrb[7].mxu0 }
 0x3da   :  { %1644 = vmatmul.mubr.msk.f32.vlgmr.msra.gmra.mrb[14].mxu1 %vm301_vm2, %v1613_v1  ;;  %1647 = vmatpush3.msra.mxu0 %v858_v34 }
 0x3db   :  { %1653 = vmatprep.mubr.msk.f32.mxu1 %vm1803_vm1, %v1802_v16  ;;  %1652 = vmatpush3.msra.mxu1 %v1635_v33 }
 0x3dc   :  { %1719 = vmatprep.subr.bf16.mxu0 %v1718_v43 }
 0x4a9   :  { %v939_v18 = vpop.f32.mrb[12].mxu1 }
 0x4aa   :  { %v1640_v19 = vpop.f32.mrb[13].mxu1  ;;  %v1019_v20 = vsel %vm454_vm3, %v939_v18, -inf }
 0x4ab   :  { %1020 = vmax.xlane.f32.xlu0 %v1019_v20 }
 0x4ad   :  { %v1015_v21 = vpop.f32.mrb[14].mxu1 }
 0x4ae   :  { %v1645_v22 = vpop.f32.mrb[15].mxu1  ;;  %v1022_v23 = vsel %vm454_vm3, %v1015_v21, -inf }
 0x4af   :  { %1023 = vmax.xlane.f32.xlu1 %v1022_v23 }
 0x538   :  { %v1021_v24 = vpop.xlane.xlu0 %1020 }
 0x539   :  { %v1025_v25 = vsub.f32 %v939_v18, %v1021_v24 }
 0x53b   :  { %v1027_v26 = vmul.f32 1.442695, %v1025_v25 }
 0x53c   :  { %v1024_v27 = vpop.xlane.xlu1 %1023 }
 0x53d   :  { %1742 = vpow2.f32 %v1027_v26  ;;  %v1026_v29 = vsub.f32 %v1015_v21, %v1024_v27 }
 0x53f   :  { %v1029_v28 = vmul.f32 1.442695, %v1026_v29 }
 0x541   :  { %1744 = vpow2.f32 %v1029_v28 }
 0x547   :  { %v1743_v30 = vpop.eup %1742 }
 0x548   :  { %v1031_v16 = vsel %vm454_vm3, %v1743_v30, 0.0 }
 0x549   :  { %1032 = vadd.xlane.f32.xlu0 %v1031_v16 }
 0x54b   :  { %v1745_v31 = vpop.eup %1744 }
 0x54c   :  { %v1034_v32 = vsel %vm454_vm3, %v1745_v31, 0.0 }
 0x54d   :  { %1035 = vadd.xlane.f32.xlu1 %v1034_v32 }
 0x5d6   :  { %v1033_v35 = vpop.xlane.xlu0 %1032 }
 0x5d7   :  { %1746 = vrcp.f32 %v1033_v35 }
 0x5da   :  { %v1036_v36 = vpop.xlane.xlu1 %1035 }
 0x5db   :  { %1748 = vrcp.f32 %v1036_v36 }
 0x5e1   :  { %v1747_v37 = vpop.eup %1746 }
 0x5e2   :  { %v1039_v38 = vmul.f32 %v1747_v37, %v1743_v30 }
 0x5e4   :  { %1042 = vst.msk [vmem:[#allocation4 + $0x10] sm:$0xff] %vm454_vm3, %v1039_v38  ;;  %1649 = vmatmul.mubr.msk.f32.vlgmr.msra.gmra.mrb[8].mxu0 %vm454_vm3, %v1039_v38 }
 0x5e5   :  { %v1749_v39 = vpop.eup %1748  ;;  %1721 = vmatpush3.bf16.msra.mxu0 %v1718_v43 }
 0x5e6   :  { %v1040_v40 = vmul.f32 %v1749_v39, %v1745_v31  ;;  %1723 = vmatprep.subr.bf16.mxu0 %v1722_v46 }
 0x5e8   :  { %1043 = vst.msk [vmem:[#allocation4 + $0x18] sm:$0xff] %vm454_vm3, %v1040_v40  ;;  %1654 = vmatmul.mubr.msk.f32.vlgmr.msra.gmra.mrb[16].mxu1 %vm454_vm3, %v1040_v40 }
 0x6b7   :  { %v1113_v47 = vpop.f32.mrb[8].mxu0 }
 0x6b8   :  { %v1650_v48 = vpop.f32.mrb[9].mxu0  ;;  %1660 = vmatprep.mubr.msk.f32.mxu0 %vm301_vm2, %v1113_v47 }
 0x6bb   :  { %v1186_v49 = vpop.f32.mrb[16].mxu1 }
 0x6bc   :  { %v1655_v50 = vpop.f32.mrb[17].mxu1  ;;  %1661 = vmatmul.mubr.msk.f32.vlgmr.msra.gmra.mrb[10].mxu0 %vm301_vm2, %v1186_v49 }
 0x6bd   :  { %1725 = vmatpush3.bf16.msra.mxu0 %v1722_v46  ;;  %1667 = vmatprep.mubr.msk.f32.mxu0 %vm301_vm2, %v2003_v3 }
 0x6c4   :  { %1668 = vmatmul.mubr.msk.f32.vlgmr.msra.gmra.mrb[10].mxu0 %vm301_vm2, %v2005_v5 }
 0x797   :  { %v1669_v52 = vpop.f32.mrb[10].mxu0 }
 0x798   :  { %v1363_v53 = vadd.f32 %v1669_v52, %v1487_v51  ;;  %v1346_v54 = vpop.f32.mrb[11].mxu0 }
 0x799   :  { %v1362_v55 = vadd.f32 %v1487_v51, %v1346_v54 }
 0x79a   :  { %v1365_v56 = vadd.f32 %v1363_v53, %v1914_v15 }
 0x79b   :  { %v1364_v57 = vadd.f32 %v1362_v55, %v1902_v13 }
 0x79c   :  { %v1369_v58 = vsel %vm49_vm0, %v1365_v56, 0.0 }
 0x79d   :  { %1370 = vadd.xlane.f32.xlu1 %v1369_v58  ;;  %v1366_v59 = vsel %vm49_vm0, %v1364_v57, 0.0 }
 0x79e   :  { %1367 = vadd.xlane.f32.xlu0 %v1366_v59 }
 0x82a   :  { %v1371_v60 = vpop.xlane.xlu1 %1370 }
 0x82b   :  { %v1374_v61 = vmul.f32 0.03125, %v1371_v60  ;;  %v1368_v62 = vpop.xlane.xlu0 %1367 }
 0x82c   :  { %v1373_v63 = vmul.f32 0.03125, %v1368_v62 }
 0x82d   :  { %v1376_v0 = vsub.f32 %v1365_v56, %v1374_v61 }
 0x82e   :  { %v1375_v1 = vsub.f32 %v1364_v57, %v1373_v63 }
 0x82f   :  { %v1378_v2 = vmul.f32 %v1376_v0, %v1376_v0 }
 0x830   :  { %v1377_v3 = vmul.f32 %v1375_v1, %v1375_v1 }
 0x831   :  { %v1382_v4 = vsel %vm49_vm0, %v1378_v2, 0.0 }
 0x832   :  { %1383 = vadd.xlane.f32.xlu1 %v1382_v4  ;;  %v1379_v15 = vsel %vm49_vm0, %v1377_v3, 0.0 }
 0x833   :  { %1380 = vadd.xlane.f32.xlu0 %v1379_v15 }
 0x834   :  { %1765 = shalt.err (!%p1762_p4)
}
 0x835   :  { %s1766_s3 = scalar_lea.hbm %s2118_s11, 512 }
 0x836   :  { %p1767_p5 = scmp.ne.s32.totalorder %s2118_s11, %s1766_s3  ;;  %p1770_p6 = scmp.lt.u32.totalorder %s1766_s3, %s2118_s11 }
 0x838   :  { %p1772_p7 = pnand %p1770_p6, %p1767_p5 }
 0x83a   :  { %1775 = shalt.err (!%p1772_p7)
}
 0x83b   :  { %s1805_s25 = smov 128   ;;  %s1806_s26 = smov 8   ;;  %v1488_v11 = vld [vmem:[%s2115_s8] ss:$0 sm:$0xff] }
 0x83c   :  { %1436 = dma.vmem_to_hbm [thread:$0]  %s1431_s7, 512, %s2118_s11, [#allocation5], %s1805_s25, %s1805_s25, %s1806_s26  }
 0x83d   :  { %v1489_v18 = vld [vmem:[%s2116_s9] ss:$0 sm:$0xff]  ;;  %s1807_s11 = smov [#allocation2]  }
 0x83e   :  { %s1418_s2 = sshll.u32 %s1807_s11, 4  ;;  %s1419_s2 = int_to_ptr.vmem [resolvable:$true] %s1418_s2 }
 0x83f   :  { %s1776_s13 = scalar_lea.vmem %s1419_s2, 256  ;;  %p1781_p9 = scmp.lt.s32.totalorder %s1419_s2, %s1419_s2 }
 0x840   :  { %p1777_p8 = scmp.ne.s32.totalorder %s1419_s2, %s1776_s13  ;;  %p1782_p10 = scmp.lt.s32.totalorder %s1776_s13, %s1776_s13 }
 0x842   :  { %p1783_p11 = por %p1782_p10, %p1781_p9 }
 0x844   :  { %p1784_p12 = pnand %p1783_p11, %p1777_p8 }
 0x8bf   :  { %v1384_v13 = vpop.xlane.xlu1 %1383 }
 0x8c0   :  { %v1386_v5 = vmul.f32 0.03125, %v1384_v13  ;;  %v1381_v6 = vpop.xlane.xlu0 %1380 }
 0x8c1   :  { %v1385_v7 = vmul.f32 0.03125, %v1381_v6 }
 0x8c2   :  { %v1388_v8 = vadd.f32 1e-05, %v1386_v5 }
 0x8c3   :  { %v1387_v9 = vadd.f32 1e-05, %v1385_v7 }
 0x8c4   :  { %1750 = vrsqrt.f32 %v1388_v8 }
 0x8c5   :  { %1752 = vrsqrt.f32 %v1387_v9 }
 0x8ce   :  { %v1751_v10 = vpop.eup %1750 }
 0x8cf   :  { %v1753_v12 = vpop.eup %1752  ;;  %v1392_v14 = vmul.f32 %v1751_v10, %v1376_v0 }
 0x8d0   :  { %v1391_v17 = vmul.f32 %v1753_v12, %v1375_v1 }
 0x8d1   :  { %v1401_v19 = vmul.f32 %v1488_v11, %v1392_v14 }
 0x8d2   :  { %v1400_v20 = vmul.f32 %v1488_v11, %v1391_v17 }
 0x8d3   :  { %v1410_v21 = vadd.f32 %v1489_v18, %v1401_v19 }
 0x8d4   :  { %v1409_v22 = vadd.f32 %v1489_v18, %v1400_v20 }
 0x8d5   :  { %1412 = vst.msk [vmem:[#allocation2 + $0x8] sm:$0xff] %vm49_vm0, %v1410_v21 }
 0x8d6   :  { %1411 = vst.msk [vmem:[#allocation2] sm:$0xff] %vm49_vm0, %v1409_v22 }
 0x8d7   :  { %1787 = shalt.err (!%p1784_p12)
}
 0x8d8   :  { %s1788_s14 = scalar_lea.hbm %s2117_s10, 256 }
 0x8d9   :  { %p1789_p13 = scmp.ne.s32.totalorder %s2117_s10, %s1788_s14  ;;  %p1792_p0 = scmp.lt.u32.totalorder %s1788_s14, %s2117_s10 }
 0x8db   :  { %p1794_p1 = pnand %p1792_p0, %p1789_p13 }
 0x8dd   :  { %1797 = shalt.err (!%p1794_p1)
}
 0x8de   :  { %1424 = dma.vmem_to_hbm [thread:$0]  %s1419_s2, 256, %s2117_s10, [#allocation3], %s1805_s25, %s1805_s25, %s1806_s26  }
 0x8df   :  { %1798 = dma.done.wait [#allocation3], 256  }
 0x8e0   :  { %1799 = vsyncadd [#allocation3], 4294967040 }
 0x8e1   :  { %1800 = dma.done.wait [#allocation5], 512  }
 0x8e2   :  { %1801 = vsyncadd [#allocation5], 4294966784 }
 0x8e3   :  { %1443 = vsyncpa [#allocation3], 1 }
 0x8e4   :  { %1444 = vsyncpa [#allocation5], 1 }

</bundles_post_ra>
